<compile_context>
chip_gen: v6e
topology: v6e:2x2x1
jax: 0.10.0
libtpu: 0.0.40
codegen_flags: <defaults>
</compile_context>

<pallas_src>
import jax
import jax.numpy as jnp
from jax.experimental import pallas as pl
from jax.experimental.pallas import tpu as pltpu

EPS = 1e-5


def _round_up(x: int, m: int) -> int:
    return ((x + m - 1) // m) * m


def _pick_tm(rows: int, itemsize: int) -> int:
    """Row-tile size: large for throughput, >=2 grid steps when possible
    (v7x dual-TC sharding), and small padded-row waste."""
    cap = 256 if itemsize >= 4 else 512   # f32 path smaller (v5e scoped VMEM)
    for tm in (512, 384, 256, 128, 64, 32, 16, 8):
        if tm > cap:
            continue
        rows_p = _round_up(rows, tm)
        if rows_p // tm >= 2 and (rows_p - rows) <= max(rows_p // 8, 8):
            return tm
    # Tiny inputs: single sublane-aligned tile.
    return min(cap, _round_up(max(rows, 1), 8))


def _const_block(shape):
    """BlockSpec for a constant-index (grid-invariant) operand.

    Single-buffered (the second pipeline buffer would be wasted VMEM);
    falls back to the default spec if this JAX version lacks pipeline_mode.
    """
    idx = lambda i: (0,) * len(shape)
    try:
        return pl.BlockSpec(shape, idx, pipeline_mode=pl.Buffered(1))
    except TypeError:
        return pl.BlockSpec(shape, idx)


def _make_kernel(d_true: int):
    inv_d = 1.0 / float(d_true)

    def prenorm_kernel(x_ref, w_ref, b_ref, o_ref):
        # x_ref: (TM, Dp) row tile.  Padded columns are exactly zero, so the
        # one-pass sum / sumsq stats (divided by the *true* D) are exact.
        x = x_ref[...].astype(jnp.float32)
        row_sum = jnp.sum(x, axis=-1, keepdims=True)          # (TM, 1)
        row_sumsq = jnp.sum(x * x, axis=-1, keepdims=True)    # (TM, 1)
        mean = row_sum * inv_d
        var = jnp.maximum(row_sumsq * inv_d - mean * mean, 0.0)
        xhat = (x - mean) * jax.lax.rsqrt(var + EPS)           # (TM, Dp)
        # LN affine is folded into the weight/bias (wrapper), so go straight
        # to the MXU.  Padded xhat columns hit zero rows of w_ref -> inert.
        acc = jnp.dot(xhat.astype(w_ref.dtype), w_ref[...],
                      preferred_element_type=jnp.float32)
        acc = acc + b_ref[...].astype(jnp.float32)
        o_ref[...] = acc.astype(o_ref.dtype)

    return prenorm_kernel


def prenorm(x, gamma, beta, w, b):
    """y = Linear(LayerNorm(x)); x: (B, N, D), w: (D, D_out) -> (B, N, D_out)."""
    B, N, D = x.shape
    D_out = w.shape[1]
    rows = B * N

    # Lane-dense padding (multiples of 128 on the last dim).
    Dp = _round_up(D, 128)
    Dop = _round_up(D_out, 128)
    TM = _pick_tm(rows, jnp.dtype(x.dtype).itemsize)
    rows_p = _round_up(rows, TM)

    # Fold the LayerNorm affine into the Linear (one-time DxD_out work):
    #   (xhat*gamma + beta) @ W + b  ==  xhat @ (diag(gamma) @ W) + (beta @ W + b)
    wf = w.astype(jnp.float32)
    w_fold = (gamma.astype(jnp.float32)[:, None] * wf).astype(w.dtype)
    b_fold = (beta.astype(jnp.float32) @ wf + b.astype(jnp.float32)).astype(w.dtype)

    # Only materialize padded copies when padding is actually required.
    x2 = x.reshape(rows, D)
    if rows_p != rows or Dp != D:
        x2 = jnp.pad(x2, ((0, rows_p - rows), (0, Dp - D)))
    if Dp != D or Dop != D_out:
        w_fold = jnp.pad(w_fold, ((0, Dp - D), (0, Dop - D_out)))
    b2 = b_fold.reshape(1, D_out)
    if Dop != D_out:
        b2 = jnp.pad(b2, ((0, 0), (0, Dop - D_out)))

    kernel = _make_kernel(D)

    out = pl.pallas_call(
        kernel,
        out_shape=jax.ShapeDtypeStruct((rows_p, Dop), x.dtype),
        grid_spec=pltpu.PrefetchScalarGridSpec(
            num_scalar_prefetch=0,
            grid=(rows_p // TM,),
            in_specs=[
                pl.BlockSpec((TM, Dp), lambda i: (i, 0)),    # x row tile
                _const_block((Dp, Dop)),                     # folded weight (resident)
                _const_block((1, Dop)),                      # folded bias
            ],
            out_specs=pl.BlockSpec((TM, Dop), lambda i: (i, 0)),
        ),
        compiler_params=pltpu.CompilerParams(
            dimension_semantics=("parallel",),
            vmem_limit_bytes=48 * 1024 * 1024),
    )(x2, w_fold, b2)

    return out[:rows, :D_out].reshape(B, N, D_out)


def prenorm_ref(x, gamma, beta, w, b):
    xf = x.astype(jnp.float32)
    mean = jnp.mean(xf, axis=-1, keepdims=True)
    var = jnp.mean((xf - mean) ** 2, axis=-1, keepdims=True)
    xhat = (xf - mean) * jax.lax.rsqrt(var + EPS)
    y = xhat * gamma.astype(jnp.float32) + beta.astype(jnp.float32)
    out = y @ w.astype(jnp.float32) + b.astype(jnp.float32)
    return out.astype(x.dtype)


if __name__ == "__main__":
    key = jax.random.PRNGKey(0)
    B, N, D = 2, 8, 32          # batch, tokens, embedding dim
    D_out = D                   # fn = Linear(dim, dim)

    k_x, k_g, k_b, k_w, k_wb = jax.random.split(key, 5)
    x = jax.random.normal(k_x, (B, N, D), dtype=jnp.float32)
    gamma = 1.0 + 0.1 * jax.random.normal(k_g, (D,), dtype=jnp.float32)
    beta = 0.1 * jax.random.normal(k_b, (D,), dtype=jnp.float32)
    w = jax.random.normal(k_w, (D, D_out), dtype=jnp.float32) / jnp.sqrt(D)
    b = 0.05 * jax.random.normal(k_wb, (D_out,), dtype=jnp.float32)

    # f32 path.
    out = jax.block_until_ready(prenorm(x, gamma, beta, w, b))
    ref = prenorm_ref(x, gamma, beta, w, b)
    assert out.shape == (B, N, D_out)
    assert jnp.allclose(out, ref, atol=1e-4, rtol=1e-4)

    # bf16 path (MXU bf16 inputs, f32 accumulation) — loose tolerance.
    xb, gb, bb = x.astype(jnp.bfloat16), gamma.astype(jnp.bfloat16), beta.astype(jnp.bfloat16)
    wb, bbw = w.astype(jnp.bfloat16), b.astype(jnp.bfloat16)
    out_b = jax.block_until_ready(prenorm(xb, gb, bb, wb, bbw))
    ref_b = prenorm_ref(xb, gb, bb, wb, bbw)
    assert out_b.shape == (B, N, D_out)
    assert jnp.allclose(out_b.astype(jnp.float32), ref_b.astype(jnp.float32),
                        atol=0.15, rtol=0.15)

    print("KERNEL_OK")
</pallas_src>

<mosaic_0001>
module attributes {stable_mosaic.version = 11 : i64} {
  func.func @prenorm_kernel(%arg0: i32, %arg1: memref<8x128xf32, #tpu.memory_space<vmem>>, %arg2: memref<128x128xf32, #tpu.memory_space<vmem>>, %arg3: memref<1x128xf32, #tpu.memory_space<vmem>>, %arg4: memref<8x128xf32, #tpu.memory_space<vmem>>) attributes {dimension_semantics = [#tpu.dimension_semantics<parallel>], iteration_bounds = array<i64: 2>, scalar_prefetch = 0 : i64, scratch_operands = 0 : i64, tpu.core_type = #tpu.core_type<tc>, window_params = [{transform_indices = @transform_0, window_bounds = array<i64: 8, 128>}, {pipeline_mode = #tpu.pipeline_mode<synchronous>, transform_indices = @transform_1, window_bounds = array<i64: 128, 128>}, {pipeline_mode = #tpu.pipeline_mode<synchronous>, transform_indices = @transform_2, window_bounds = array<i64: 1, 128>}, {transform_indices = @transform_3, window_bounds = array<i64: 8, 128>}]} {
    %c0 = arith.constant 0 : index
    %c0_0 = arith.constant 0 : index
    %0 = vector.load %arg1[%c0, %c0_0] : memref<8x128xf32, #tpu.memory_space<vmem>>, vector<8x128xf32>
    %cst = arith.constant dense<0.000000e+00> : vector<8xf32>
    %1 = vector.multi_reduction <add>, %0, %cst [1] : vector<8x128xf32> to vector<8xf32>
    %2 = vector.shape_cast %1 : vector<8xf32> to vector<8x1xf32>
    %3 = arith.mulf %0, %0 : vector<8x128xf32>
    %cst_1 = arith.constant dense<0.000000e+00> : vector<8xf32>
    %4 = vector.multi_reduction <add>, %3, %cst_1 [1] : vector<8x128xf32> to vector<8xf32>
    %5 = vector.shape_cast %4 : vector<8xf32> to vector<8x1xf32>
    %cst_2 = arith.constant 3.125000e-02 : f32
    %6 = vector.broadcast %cst_2 : f32 to vector<8x1xf32>
    %7 = arith.mulf %2, %6 : vector<8x1xf32>
    %cst_3 = arith.constant 3.125000e-02 : f32
    %8 = vector.broadcast %cst_3 : f32 to vector<8x1xf32>
    %9 = arith.mulf %5, %8 : vector<8x1xf32>
    %10 = arith.mulf %7, %7 : vector<8x1xf32>
    %11 = arith.subf %9, %10 : vector<8x1xf32>
    %cst_4 = arith.constant 0.000000e+00 : f32
    %12 = vector.broadcast %cst_4 : f32 to vector<8x1xf32>
    %13 = arith.maximumf %11, %12 : vector<8x1xf32>
    %14 = vector.broadcast %7 : vector<8x1xf32> to vector<8x128xf32>
    %15 = arith.subf %0, %14 : vector<8x128xf32>
    %cst_5 = arith.constant 9.99999974E-6 : f32
    %16 = vector.broadcast %cst_5 : f32 to vector<8x1xf32>
    %17 = arith.addf %13, %16 : vector<8x1xf32>
    %18 = math.rsqrt %17 : vector<8x1xf32>
    %19 = vector.broadcast %18 : vector<8x1xf32> to vector<8x128xf32>
    %20 = arith.mulf %15, %19 : vector<8x128xf32>
    %c0_6 = arith.constant 0 : index
    %c0_7 = arith.constant 0 : index
    %21 = vector.load %arg2[%c0_6, %c0_7] : memref<128x128xf32, #tpu.memory_space<vmem>>, vector<128x128xf32>
    %cst_8 = arith.constant dense<0.000000e+00> : vector<8x128xf32>
    %22 = tpu.matmul %20, %21, %cst_8 {dimension_numbers = #tpu.dot_dimension_numbers<[1], [0], [0], [1], [0, 0, 1, 1], [], []>} : vector<8x128xf32>, vector<128x128xf32>, vector<8x128xf32> -> vector<8x128xf32>
    %c0_9 = arith.constant 0 : index
    %c0_10 = arith.constant 0 : index
    %23 = vector.load %arg3[%c0_9, %c0_10] : memref<1x128xf32, #tpu.memory_space<vmem>>, vector<1x128xf32>
    %24 = vector.broadcast %23 : vector<1x128xf32> to vector<8x128xf32>
    %25 = arith.addf %22, %24 : vector<8x128xf32>
    %c0_11 = arith.constant 0 : index
    %c0_12 = arith.constant 0 : index
    %26 = vector.load %arg4[%c0_11, %c0_12] : memref<8x128xf32, #tpu.memory_space<vmem>>, vector<8x128xf32>
    tpu.vector_store %arg4[%c0_11, %c0_12], %25 {strides = array<i32>} : memref<8x128xf32, #tpu.memory_space<vmem>>, vector<8x128xf32>,
    return
  }
  func.func @transform_0(%arg0: i32) -> (i32, i32) {
    %c0_i32 = arith.constant 0 : i32
    %c0_i32_0 = arith.constant 0 : i32
    return %arg0, %c0_i32 : i32, i32
  }
  func.func @transform_1(%arg0: i32) -> (i32, i32) {
    %c0_i32 = arith.constant 0 : i32
    %c0_i32_0 = arith.constant 0 : i32
    %c0_i32_1 = arith.constant 0 : i32
    return %c0_i32, %c0_i32_0 : i32, i32
  }
  func.func @transform_2(%arg0: i32) -> (i32, i32) {
    %c0_i32 = arith.constant 0 : i32
    %c0_i32_0 = arith.constant 0 : i32
    %c0_i32_1 = arith.constant 0 : i32
    return %c0_i32, %c0_i32_0 : i32, i32
  }
  func.func @transform_3(%arg0: i32) -> (i32, i32) {
    %c0_i32 = arith.constant 0 : i32
    %c0_i32_0 = arith.constant 0 : i32
    return %arg0, %c0_i32 : i32, i32
  }
}

</mosaic_0001>

<bundles_post_ra>
// kernel: tpu_custom_call.1
= control target key start
LH: loop header
LB: loop body
LE: loop exit
PB: predicated region body
PF: predicated region fallthrough
CT: control target
= control target key end

     0   :  { %8 = vsyncpa [#allocation3], 0  ;;  %s858_s0 = inlined_call_operand.hbm [shape: f32[16,128], index: 0, kind: input, shape index: {}]   ;;  %s859_s1 = inlined_call_operand.hbm [shape: f32[128,128], index: 1, kind: input, shape index: {}]   ;;  %s860_s2 = inlined_call_operand.vmem [shape: f32[1,128], index: 2, kind: input, shape index: {}]   ;;  %s861_s3 = inlined_call_operand.hbm [shape: f32[16,128], index: 3, kind: output, shape index: {}]  }
   0x1   :  { %10 = vsyncpa [#allocation3 + $0x1], 0 }
   0x2   :  { %11 = vsyncpa [#allocation6], 0 }
   0x3   :  { %12 = vsyncpa [#allocation4], 0 }
   0x4   :  { %14 = vsyncpa [#allocation4 + $0x1], 0  ;;  %s685_s12 = smov 0   ;;  %s687_s13 = smov 0  }
   0x5   :  { %s689_s14 = smov 0   ;;  %s691_s15 = smov 0  }
   0x6 LB: > { %s706_s16 = sadd.s32 4294967295, %s656_s15   ;;  %s404_s17 = sadd.s32 4294967294, %s656_s15   ;;  %s656_s15 = sphi %s691_s15, %s883_s15   ;;  %s652_s14 = sphi %s689_s14, %s882_s14   ;;  %s648_s13 = sphi %s687_s13, %s881_s13   ;;  %s644_s12 = sphi %s685_s12, %s880_s12  }
   0x7   : > { %p40_p0 = scmp.ne.s32.totalorder %s648_s13, %s644_s12  ;;  %p862_p1 = scmp.eq.s32.totalorder %s706_s16, 0 }
   0x8   : > { %p112_p3 = scmp.eq.s32.totalorder %s404_s17, 1  ;;  %p405_p5 = scmp.ge.s32.totalorder %s656_s15, 1 }
   0x9   : > { %p715_p4 = por %p862_p1, %p40_p0  ;;  %p119_p7 = scmp.lt.s32.totalorder %s656_s15, 3 }
   0xa   : > { %p720_p6 = por %p112_p3, %p40_p0  ;;  %s658_s21 = smov [#allocation5]  }
   0xb   : > { %s866_s18 = scalar_select %p715_p4, 1, 0 }
   0xc   : > { %s867_s19 = scalar_select %p720_p6, 1, 0 }
   0xd   : > { %p725_p8 = pnand %p405_p5, %p119_p7  ;;  %s131_s22 = sshll.u32 %s658_s21, 4  ;;  %s132_s22 = int_to_ptr.vmem [resolvable:$true] %s131_s22 }
   0xe   : > { %s739_s24 = sadd.s32 1, %s656_s15   ;;  %s27_s25 = sadd.s32 1, %s652_s14 }
   0xf   : > { %s868_s20 = scalar_select %p725_p8, 1, 0 }
  0x10   : > { %p479_p9 = pneg %p725_p8  ;;  %s24_s26 = ssub.s32 %s656_s15, %s739_s24 }
  0x11   : > { %s545_s27 = scalar_lea.vmem %s132_s22, 2048  ;;  %p553_p5 = scmp.lt.s32.totalorder %s132_s22, %s132_s22 }
  0x12   : > { %p734_p11 = pnand %p479_p9, %p862_p1  ;;  %p546_p13 = scmp.ne.s32.totalorder %s132_s22, %s545_s27 }
  0x13   : > { %p554_p7 = scmp.lt.s32.totalorder %s545_s27, %s545_s27 }
  0x14   : > { %p536_p12 = pneg %p734_p11 }
  0x15   : > { %p555_p10 = por %p554_p7, %p553_p5 }
  0x16   : > { %p548_p0 = pnand %p546_p13, %p536_p12 }
  0x18   : > { %p549_p3 = pneg %p548_p0 }
  0x1a   : > { %p556_p2 = pnand %p555_p10, %p549_p3 }
  0x1c   : > { %559 = shalt.err (!%p556_p2)
}
  0x1d   : > { %s659_s28 = smov 128   ;;  %s660_s29 = smov 8  }
  0x1e   : > { %482 = dma.hbm_to_vmem [thread:$0]  (!%p734_p11), %s859_s1, 2048, %s132_s22, [#allocation6], %s659_s28, %s659_s28, %s660_s29  }
  0x1f   : > { %p25_p9 = scmp.eq.s32.totalorder %s24_s26, 0  ;;  %p34_p12 = scmp.ne.s32.totalorder %s652_s14, %s648_s13 }
  0x20   : > { %p35_p10 = scmp.eq.s32.totalorder %s656_s15, 0  ;;  %p492_p2 = scmp.lt.s32.totalorder %s656_s15, 2 }
  0x21   : > { %s756_s5 = scalar_select %p25_p9, %s652_s14, %s27_s25  }
  0x22   : > { %p36_p13 = por %p35_p10, %p34_p12  ;;  %p870_p0 = scmp.eq.s32.totalorder %s706_s16, 1 }
  0x23   : > { %s148_s7 = sand.u32 1, %s652_s14   ;;  %s409_s8 = sshll.u32 %s656_s15, 7 }
  0x24   : > { %p760_p3 = por %p870_p0, %p34_p12  ;;  %s408_s9 = sshll.u32 %s148_s7, 3 }
  0x25   : > { %s769_s17 = scalar_lea.hbm %s858_s0, %s409_s8  ;;  %s152_s21 = scalar_lea.vmem [#allocation2], %s408_s9 }
  0x26   : > { %s871_s6 = scalar_select %p760_p3, 1, 0 }
  0x27   : > { %s159_s22 = sshll.u32 %s152_s21, 4  ;;  %p771_p11 = pnand %p492_p2, %p36_p13  ;;  %s160_s22 = int_to_ptr.vmem [resolvable:$true] %s159_s22 }
  0x28   : > { %s149_s25 = scalar_lea.sflag [#allocation3], %s148_s7  ;;  %s560_s26 = scalar_lea.hbm %s769_s17, 128 }
  0x29   : > { %p561_p5 = scmp.ne.s32.totalorder %s769_s17, %s560_s26  ;;  %p562_p7 = pneg %p771_p11 }
  0x2a   : > { %s565_s29 = scalar_lea.hbm %s858_s0, 256  ;;  %p566_p10 = scmp.lt.s32.totalorder %s769_s17, %s858_s0 }
  0x2b   : > { %p563_p9 = pnand %p562_p7, %p561_p5  ;;  %p567_p2 = scmp.lt.s32.totalorder %s565_s29, %s560_s26 }
  0x2d   : > { %p564_p12 = pneg %p563_p9  ;;  %p568_p13 = por %p567_p2, %p566_p10 }
  0x2f   : > { %p569_p0 = pnand %p568_p13, %p564_p12 }
  0x31   : > { %572 = shalt.err (!%p569_p0)
}
  0x32   : > { %s573_s8 = scalar_lea.vmem %s160_s22, 128  ;;  %s661_s7 = smov [#allocation2]  }
  0x33   : > { %p574_p1 = scmp.ne.s32.totalorder %s160_s22, %s573_s8  ;;  %s578_s9 = sshll.u32 %s661_s7, 4  ;;  %s579_s9 = int_to_ptr.vmem [resolvable:$false] %s578_s9 }
  0x34   : > { %s580_s10 = scalar_lea.vmem %s579_s9, 256  ;;  %p581_p5 = scmp.lt.s32.totalorder %s160_s22, %s579_s9 }
  0x35   : > { %p576_p6 = pnand %p574_p1, %p562_p7  ;;  %p582_p9 = scmp.lt.s32.totalorder %s580_s10, %s573_s8 }
  0x37   : > { %p577_p3 = pneg %p576_p6  ;;  %p583_p4 = por %p582_p9, %p581_p5 }
  0x39   : > { %p584_p8 = pnand %p583_p4, %p577_p3 }
  0x3b   : > { %587 = shalt.err (!%p584_p8)
}
  0x3c   : > { %486 = dma.hbm_to_vmem [thread:$0]  (!%p771_p11), %s769_s17, 128, %s160_s22, %s149_s25  }
  0x3d   : > { %p873_p12 = scmp.ne.s32.totalorder %s868_s20, 0 }
  0x3e   : > { %s792_s11 = sand.u32 (!%p873_p12), 1, %s648_s13   ;;  %p874_p1 = scmp.ne.s32.totalorder (!%p873_p12), %s866_s18, 0 }
  0x3f   : > { %168 = sbr.rel (%p873_p12) target bundleno = 447 (0x1bf), region = 32  ;;  %s411_s21 = sshll.u32 (!%p873_p12), %s792_s11, 3 }
  0x40   : > { %s171_s26 = scalar_lea.sflag (!%p873_p12), [#allocation3], %s792_s11  ;;  %s174_s27 = scalar_lea.vmem (!%p873_p12), [#allocation2], %s411_s21 }
  0x44   : > { %631 = dma.done.wait (%p874_p1), %s171_s26, 128  }
  0x45   : > { %633 = vsyncadd (%p874_p1), %s171_s26, 4294967168  ;;  %p875_p4 = scmp.eq.s32.totalorder %s706_s16, 0 }
  0x47   : > { %635 = dma.done.wait (%p875_p4), [#allocation6], 2048   ;;  %p876_p6 = pmov %p875_p4 }
  0x48   : > { %v662_v0 = vmov 0.0   ;;  %v806_v1 = vld [vmem:[%s174_s27] sm:$0xff]  ;;  %v229_v5 = vld [vmem:[#allocation5 + $0x68] sm:$0xff]  ;;  %v228_v6 = vld [vmem:[#allocation5 + $0x60] sm:$0xff]  ;;  %vm663_vm0 = vmmov 0   ;;  %s416_s17 = sshll.u32 %s706_s16, 7 }
  0x49   : > { %637 = vsyncadd (%p876_p6), [#allocation6], 4294965248  ;;  %436 = vmatprep.subr.mxu0 %v662_v0  ;;  %v231_v2 = vld [vmem:[#allocation5 + $0x78] sm:$0xff]  ;;  %v230_v3 = vld [vmem:[#allocation5 + $0x70] sm:$0xff]  ;;  %202 = vadd.xlane.f32.xlu0 %v806_v1  ;;  %v204_v4 = vmul.f32 %v806_v1, %v806_v1  ;;  %s200_s22 = scalar_lea.vmem [#allocation7], %s411_s21  ;;  %s821_s29 = scalar_lea.hbm %s861_s3, %s416_s17 }
  0x4a   : > { %437 = vmatpush3.msra.mxu0 %v231_v2  ;;  %v227_v7 = vld [vmem:[#allocation5 + $0x58] sm:$0xff]  ;;  %v226_v8 = vld [vmem:[#allocation5 + $0x50] sm:$0xff]  ;;  %v225_v9 = vld [vmem:[#allocation5 + $0x48] sm:$0xff]  ;;  %468 = vmatprep.mubr.msk.f32.mxu0 %vm663_vm0, %v662_v0  ;;  %s324_s23 = sshll.u32 %s200_s22, 4  ;;  %s311_s30 = scalar_lea.sflag [#allocation4], %s792_s11  ;;  %s325_s23 = int_to_ptr.vmem [resolvable:$true] %s324_s23 }
  0x4b   : > { %438 = vmatprep.subr.mxu0 %v662_v0  ;;  %v224_v10 = vld [vmem:[#allocation5 + $0x40] sm:$0xff]  ;;  %v223_v11 = vld [vmem:[#allocation5 + $0x38] sm:$0xff]  ;;  %v222_v12 = vld [vmem:[#allocation5 + $0x30] sm:$0xff]  ;;  %s588_s4 = scalar_lea.vmem %s325_s23, 128  ;;  %p877_p3 = scmp.ne.s32.totalorder %s871_s6, 0 }
  0x4c   : > { %439 = vmatpush3.msra.mxu0 %v230_v3  ;;  %v221_v13 = vld [vmem:[#allocation5 + $0x28] sm:$0xff]  ;;  %v220_v14 = vld [vmem:[#allocation5 + $0x20] sm:$0xff]  ;;  %v219_v15 = vld [vmem:[#allocation5 + $0x18] sm:$0xff]  ;;  %p589_p8 = scmp.ne.s32.totalorder %s325_s23, %s588_s4  ;;  %s664_s16 = smov [#allocation7]  }
  0x4d   : > { %440 = vmatprep.subr.mxu0 %v662_v0  ;;  %205 = vadd.xlane.f32.xlu0 %v204_v4  ;;  %v218_v16 = vld [vmem:[#allocation5 + $0x10] sm:$0xff]  ;;  %v217_v17 = vld [vmem:[#allocation5 + $0x8] sm:$0xff]  ;;  %v216_v18 = vld [vmem:[#allocation5] sm:$0xff]  ;;  %s592_s8 = sshll.u32 %s664_s16, 4  ;;  %s593_s8 = int_to_ptr.vmem [resolvable:$false] %s592_s8 }
  0x4e   : > { %441 = vmatpush3.msra.mxu0 %v229_v5  ;;  %v414_v30 = vld [vmem:[%s860_s2] ss:$0 sm:$0xff]  ;;  %p590_p11 = pnand %p589_p8, %p877_p3  ;;  %s594_s7 = scalar_lea.vmem %s593_s8, 256 }
  0x4f   : > { %442 = vmatprep.subr.mxu0 %v662_v0  ;;  %p595_p10 = scmp.lt.s32.totalorder %s325_s23, %s593_s8  ;;  %p596_p2 = scmp.lt.s32.totalorder %s594_s7, %s588_s4 }
  0x50   : > { %443 = vmatpush3.msra.mxu0 %v228_v6  ;;  %p591_p7 = pneg %p590_p11 }
  0x51   : > { %444 = vmatprep.subr.mxu0 %v662_v0  ;;  %p597_p13 = por %p596_p2, %p595_p10 }
  0x52   : > { %445 = vmatpush3.msra.mxu0 %v227_v7 }
  0x53   : > { %446 = vmatprep.subr.mxu0 %v662_v0  ;;  %p598_p0 = pnand %p597_p13, %p591_p7 }
  0x54   : > { %447 = vmatpush3.msra.mxu0 %v226_v8 }
  0x55   : > { %448 = vmatprep.subr.mxu0 %v662_v0 }
  0x56   : > { %449 = vmatpush3.msra.mxu0 %v225_v9 }
  0x57   : > { %450 = vmatprep.subr.mxu0 %v662_v0 }
  0x58   : > { %451 = vmatpush3.msra.mxu0 %v224_v10 }
  0x59   : > { %452 = vmatprep.subr.mxu0 %v662_v0 }
  0x5a   : > { %453 = vmatpush3.msra.mxu0 %v223_v11 }
  0x5b   : > { %454 = vmatprep.subr.mxu0 %v662_v0 }
  0x5c   : > { %455 = vmatpush3.msra.mxu0 %v222_v12 }
  0x5d   : > { %456 = vmatprep.subr.mxu0 %v662_v0 }
  0x5e   : > { %457 = vmatpush3.msra.mxu0 %v221_v13 }
  0x5f   : > { %458 = vmatprep.subr.mxu0 %v662_v0 }
  0x60   : > { %459 = vmatpush3.msra.mxu0 %v220_v14 }
  0x61   : > { %460 = vmatprep.subr.mxu0 %v662_v0 }
  0x62   : > { %461 = vmatpush3.msra.mxu0 %v219_v15 }
  0x63   : > { %462 = vmatprep.subr.mxu0 %v662_v0 }
  0x64   : > { %463 = vmatpush3.msra.mxu0 %v218_v16 }
  0x65   : > { %464 = vmatprep.subr.mxu0 %v662_v0 }
  0x66   : > { %465 = vmatpush3.msra.mxu0 %v217_v17 }
  0x67   : > { %466 = vmatprep.subr.mxu0 %v662_v0 }
  0x68   : > { %467 = vmatpush3.msra.mxu0 %v216_v18 }
  0xd2   : > { %v203_v19 = vpop.xlane.xlu0 %202 }
  0xd3   : > { %v207_v20 = vmul.f32 0.03125, %v203_v19 }
  0xd5   : > { %v209_v22 = vmul.f32 %v207_v20, %v207_v20  ;;  %v212_v27 = vsub.f32 %v806_v1, %v207_v20 }
  0xd6   : > { %v206_v21 = vpop.xlane.xlu0 %205 }
  0xd7   : > { %v208_v23 = vmul.f32 0.03125, %v206_v21 }
  0xd9   : > { %v210_v24 = vsub.f32 %v208_v23, %v209_v22 }
  0xdb   : > { %v211_v25 = vmax.f32 %v210_v24, 0.0 }
  0xdd   : > { %v213_v26 = vadd.f32 1e-05, %v211_v25 }
  0xdf   : > { %532 = vrsqrt.f32 %v213_v26 }
  0xec   : > { %v533_v28 = vpop.eup %532 }
  0xed   : > { %v215_v29 = vmul.f32 %v533_v28, %v212_v27 }
  0xef   : > { %469 = vmatmul.mubr.f32.vlgmr.msra.gmra.mxu0 %v215_v29 }
 0x1af   : > { %v305_v31 = vpop.f32.mrf.mxu0 }
 0x1b0   : > { %v306_v32 = vadd.f32 %v414_v30, %v305_v31 }
 0x1b1   : > { %v470_v33 = vpop.f32.mrf.mxu0 }
 0x1b2   : > { %309 = vst [vmem:[%s200_s22] sm:$0xff] %v306_v32 }
 0x1b3   : > { %601 = shalt.err (!%p598_p0)
}
 0x1b4   : > { %s602_s9 = scalar_lea.hbm %s821_s29, 128  ;;  %s606_s21 = scalar_lea.hbm %s861_s3, 256 }
 0x1b5   : > { %p603_p5 = scmp.ne.s32.totalorder %s821_s29, %s602_s9  ;;  %p607_p1 = scmp.lt.s32.totalorder %s821_s29, %s861_s3 }
 0x1b6   : > { %p608_p4 = scmp.lt.s32.totalorder %s606_s21, %s602_s9 }
 0x1b7   : > { %p604_p9 = pnand %p603_p5, %p877_p3 }
 0x1b8   : > { %p609_p6 = por %p608_p4, %p607_p1 }
 0x1b9   : > { %p605_p12 = pneg %p604_p9 }
 0x1bb   : > { %p610_p8 = pnand %p609_p6, %p605_p12 }
 0x1bd   : > { %613 = shalt.err (!%p610_p8)
}
 0x1be   : > { %477 = dma.vmem_to_hbm [thread:$0]  (%p877_p3), %s325_s23, 128, %s821_s29, %s311_s30  }
 0x1bf PF: > { %s336_s18 = sand.u32 1, %s644_s12   ;;  %p878_p11 = scmp.ne.s32.totalorder %s867_s19, 0 }
 0x1c0   : > { %p879_p7 = scmp.ge.s32.totalorder %s656_s15, 2  ;;  %s337_s20 = scalar_lea.sflag [#allocation4], %s336_s18 }
 0x1c2   : > { %p488_p10 = pnand %p879_p7, %p878_p11 }
 0x1c4   : > { %p489_p2 = pneg %p488_p10 }
 0x1c6   : > { %639 = dma.done.wait (%p489_p2), %s337_s20, 128  }
 0x1c7   : > { %641 = vsyncadd (%p489_p2), %s337_s20, 4294967168  ;;  %p17_p13 = scmp.ge.s32.totalorder %s739_s24, 4   ;;  %s880_s12 = smov %s648_s13 }
 0x1c8   : > { %s881_s13 = smov %s652_s14  ;;  %s882_s14 = smov %s756_s5 }
 0x1c9   : > { %s883_s15 = smov %s739_s24  ;;  %19 = sbr.rel (!%p17_p13) target bundleno = 6 (0x6), region = 81 }
 0x1ce   :  { %342 = vsyncpa [#allocation3], 1 }
 0x1cf   :  { %344 = vsyncpa [#allocation3 + $0x1], 1 }
 0x1d0   :  { %345 = vsyncpa [#allocation6], 1 }
 0x1d1   :  { %346 = vsyncpa [#allocation4], 1 }
 0x1d2   :  { %348 = vsyncpa [#allocation4 + $0x1], 1 }

</bundles_post_ra>
